<compile_context>
chip_gen: v6e
topology: v6e:2x2x1
jax: 0.10.0
libtpu: 0.0.40
codegen_flags: <defaults>
</compile_context>

<pallas_src>
import functools

import jax
import jax.numpy as jnp
from jax.experimental import pallas as pl
from jax.experimental.pallas import tpu as pltpu

_CHUNK = 512  # lane sub-chunk inside a batch tile (bounds live ranges)


def rk_pinn_kernel(x_ref, w1_ref, b1_ref, w2_ref, b2_ref, w3_ref, b3_ref,
                   o_ref, *, use_bf16=False):
    # Feature-major layout (batch on the 128-wide lane axis):
    #   x_ref : (input_dim, TB)
    #   w1    : (H, input_dim)   b1 : (H, 1)
    #   w2    : (H, H)           b2 : (H, 1)
    #   w3    : (out, H)         b3 : (out, 1)
    #   o_ref : (out, TB)
    input_dim, tb = x_ref.shape

    w1 = w1_ref[...]
    b1 = b1_ref[...]
    w2 = w2_ref[...]
    b2 = b2_ref[...]
    w3 = w3_ref[...]
    b3 = b3_ref[...]
    if use_bf16:
        w2_c = w2.astype(jnp.bfloat16)
        w3_c = w3.astype(jnp.bfloat16)

    chunk = tb if tb <= _CHUNK else _CHUNK
    n_chunks = tb // chunk  # wrapper guarantees chunk | tb

    # Short, fixed trip count -> static unrolled loop (LLO sees straight-line
    # code); each chunk's intermediates die at its store.
    for c in range(n_chunks):
        lo = c * chunk
        xs = x_ref[:, lo:lo + chunk]                       # (input_dim, chunk)

        # ---- Layer 1 on the VPU: K = input_dim (=2) is too small for the MXU.
        h = w1[:, 0:1] * xs[0:1, :]                        # (H, chunk)
        for k in range(1, input_dim):
            h = h + w1[:, k:k + 1] * xs[k:k + 1, :]
        h = jnp.tanh(h + b1)

        if use_bf16:
            # bf16 activation path (v6e/v7x): bf16 tanh/activations, f32 accum.
            h = h.astype(jnp.bfloat16)
            h = jnp.tanh(
                jnp.dot(w2_c, h, preferred_element_type=jnp.float32) + b2
            ).astype(jnp.bfloat16)
            y = jnp.dot(w3_c, h, preferred_element_type=jnp.float32) + b3
        else:
            # ---- Layer 2 on the MXU.
            h = jnp.tanh(
                jnp.dot(w2, h, preferred_element_type=jnp.float32) + b2
            )
            # ---- Output layer on the MXU.
            y = jnp.dot(w3, h, preferred_element_type=jnp.float32) + b3

        # Lane-dense store (chunk lanes of batch).
        o_ref[:, lo:lo + chunk] = y.astype(o_ref.dtype)


def _pick_tb(batch):
    """Batch tile: big tiles amortize the ~0.35us/step overhead; keep >= 2
    tiles for large batches so v7x's two TensorCores both get work."""
    b128 = ((batch + 127) // 128) * 128
    if b128 <= 512:
        return b128                      # single small tile
    half = ((b128 // 2 + _CHUNK - 1) // _CHUNK) * _CHUNK
    return max(_CHUNK, min(4096, half))  # multiple of _CHUNK, capped at 4096


def rk_pinn_forward_fm(x_fm, params, tb=None, use_bf16=False):
    """Primary, feature-major entry point.

    x_fm: (input_dim, batch) f32.  Returns (output_dim, batch) f32.
    No padding / transpose HBM passes; ragged last block handled by Pallas.
    """
    w1, b1 = params["w1"], params["b1"]
    w2, b2 = params["w2"], params["b2"]
    w3, b3 = params["w3"], params["b3"]

    input_dim, batch = x_fm.shape
    hidden_dim = w1.shape[0]
    out_dim = w3.shape[0]

    if tb is None:
        tb = _pick_tb(batch)
    assert tb % 128 == 0, "batch tile must be a multiple of 128 lanes"
    assert tb <= _CHUNK or tb % _CHUNK == 0, "large tiles must be multiples of the chunk"

    grid = (pl.cdiv(batch, tb),)

    # Weights/biases pinned resident in VMEM across all grid steps.
    def pin(a):
        return pl.BlockSpec(a.shape, lambda i: (0, 0))

    flops = 2 * batch * (input_dim * hidden_dim
                         + hidden_dim * hidden_dim
                         + hidden_dim * out_dim)
    transcendentals = 2 * batch * hidden_dim
    bytes_accessed = 4 * (
        input_dim * batch + out_dim * batch
        + hidden_dim * input_dim + hidden_dim
        + hidden_dim * hidden_dim + hidden_dim
        + out_dim * hidden_dim + out_dim
    )

    return pl.pallas_call(
        functools.partial(rk_pinn_kernel, use_bf16=use_bf16),
        out_shape=jax.ShapeDtypeStruct((out_dim, batch), jnp.float32),
        grid=grid,
        in_specs=[
            pl.BlockSpec((input_dim, tb), lambda i: (0, i)),   # x tile streams
            pin(w1), pin(b1),
            pin(w2), pin(b2),
            pin(w3), pin(b3),
        ],
        out_specs=pl.BlockSpec((out_dim, tb), lambda i: (0, i)),
        compiler_params=pltpu.CompilerParams(
            dimension_semantics=("parallel",),
            vmem_limit_bytes=32 * 1024 * 1024,
        ),
        cost_estimate=pl.CostEstimate(
            flops=flops,
            transcendentals=transcendentals,
            bytes_accessed=bytes_accessed,
        ),
    )(x_fm, w1, b1, w2, b2, w3, b3)


def rk_pinn_forward(x, params, tb=None, use_bf16=False):
    """Batch-major compatibility wrapper matching the PyTorch interface:
    x: (batch, input_dim) -> (batch, output_dim).  Adds two transpose passes;
    prefer `rk_pinn_forward_fm` on hot paths."""
    return rk_pinn_forward_fm(x.T, params, tb=tb, use_bf16=use_bf16).T


def init_params(key, input_dim, hidden_dim, output_dim):
    """nn.Linear-style U(-1/sqrt(fan_in), 1/sqrt(fan_in)) init.

    Weights in PyTorch orientation (out_features, in_features); biases are
    column vectors (out_features, 1) for the feature-major kernel layout.
    """
    keys = jax.random.split(key, 6)

    def linear(kw, kb, fan_in, fan_out):
        bound = 1.0 / jnp.sqrt(jnp.float32(fan_in))
        w = jax.random.uniform(kw, (fan_out, fan_in), jnp.float32, -bound, bound)
        b = jax.random.uniform(kb, (fan_out, 1), jnp.float32, -bound, bound)
        return w, b

    w1, b1 = linear(keys[0], keys[1], input_dim, hidden_dim)
    w2, b2 = linear(keys[2], keys[3], hidden_dim, hidden_dim)
    w3, b3 = linear(keys[4], keys[5], hidden_dim, output_dim)
    return {"w1": w1, "b1": b1, "w2": w2, "b2": b2, "w3": w3, "b3": b3}


def rk_pinn_reference(x, params):
    """Pure-JAX reference matching PyTorch forward semantics (batch-major)."""
    h = jnp.tanh(x @ params["w1"].T + params["b1"].T)
    h = jnp.tanh(h @ params["w2"].T + params["b2"].T)
    return h @ params["w3"].T + params["b3"].T


if __name__ == "__main__":
    # Small shapes consistent with an RK-PINN for the Van der Pol oscillator:
    # input = 2 state variables (x, v), hidden = 32, output = 2.
    batch, input_dim, hidden_dim, output_dim = 8, 2, 32, 2

    key = jax.random.PRNGKey(0)
    k_params, k_x, k_x2 = jax.random.split(key, 3)
    params = init_params(k_params, input_dim, hidden_dim, output_dim)

    # Primary check: tiny batch, feature-major path (single partial tile,
    # grid=(1,), ragged lanes masked on the output store).
    x = jax.random.normal(k_x, (batch, input_dim), dtype=jnp.float32)
    out_fm = jax.block_until_ready(rk_pinn_forward_fm(x.T, params))
    ref = rk_pinn_reference(x, params)
    assert out_fm.shape == (output_dim, batch), out_fm.shape
    assert jnp.allclose(out_fm.T, ref, atol=1e-5, rtol=1e-5), \
        "mismatch vs reference (batch=8, feature-major)"

    # Batch-major compatibility wrapper on the same data.
    out_bm = jax.block_until_ready(rk_pinn_forward(x, params))
    assert out_bm.shape == (batch, output_dim), out_bm.shape
    assert jnp.allclose(out_bm, ref, atol=1e-5, rtol=1e-5), \
        "mismatch vs reference (batch=8, batch-major wrapper)"

    # Secondary check: multi-tile grid with a ragged last block (300 = 2*128
    # + 44): exercises pinned-weight index_maps, the parallel batch grid and
    # Pallas partial-block masking — no padding / slicing in the wrapper.
    batch2 = 300
    x2 = jax.random.normal(k_x2, (batch2, input_dim), dtype=jnp.float32)
    out2 = jax.block_until_ready(rk_pinn_forward_fm(x2.T, params, tb=128))
    ref2 = rk_pinn_reference(x2, params)
    assert out2.shape == (output_dim, batch2), out2.shape
    assert jnp.allclose(out2.T, ref2, atol=1e-5, rtol=1e-5), \
        "mismatch vs reference (batch=300, ragged tiles)"

    print("KERNEL_OK")
</pallas_src>

<mosaic_0001>
module attributes {stable_mosaic.version = 11 : i64} {
  func.func @rk_pinn_kernel(%arg0: i32, %arg1: memref<2x128xf32, #tpu.memory_space<vmem>>, %arg2: memref<32x2xf32, #tpu.memory_space<vmem>>, %arg3: memref<32x1xf32, #tpu.memory_space<vmem>>, %arg4: memref<32x32xf32, #tpu.memory_space<vmem>>, %arg5: memref<32x1xf32, #tpu.memory_space<vmem>>, %arg6: memref<2x32xf32, #tpu.memory_space<vmem>>, %arg7: memref<2x1xf32, #tpu.memory_space<vmem>>, %arg8: memref<2x128xf32, #tpu.memory_space<vmem>>) attributes {dimension_semantics = [#tpu.dimension_semantics<parallel>], iteration_bounds = array<i64: 1>, scalar_prefetch = 0 : i64, scratch_operands = 0 : i64, tpu.core_type = #tpu.core_type<tc>, window_params = [{transform_indices = @transform_0, window_bounds = array<i64: 2, 128>}, {pipeline_mode = #tpu.pipeline_mode<synchronous>, transform_indices = @transform_1, window_bounds = array<i64: 32, 2>}, {pipeline_mode = #tpu.pipeline_mode<synchronous>, transform_indices = @transform_2, window_bounds = array<i64: 32, 1>}, {pipeline_mode = #tpu.pipeline_mode<synchronous>, transform_indices = @transform_3, window_bounds = array<i64: 32, 32>}, {pipeline_mode = #tpu.pipeline_mode<synchronous>, transform_indices = @transform_4, window_bounds = array<i64: 32, 1>}, {pipeline_mode = #tpu.pipeline_mode<synchronous>, transform_indices = @transform_5, window_bounds = array<i64: 2, 32>}, {pipeline_mode = #tpu.pipeline_mode<synchronous>, transform_indices = @transform_6, window_bounds = array<i64: 2, 1>}, {transform_indices = @transform_7, window_bounds = array<i64: 2, 128>}]} {
    %c0 = arith.constant 0 : index
    %c0_0 = arith.constant 0 : index
    %0 = vector.load %arg2[%c0, %c0_0] : memref<32x2xf32, #tpu.memory_space<vmem>>, vector<32x2xf32>
    %c0_1 = arith.constant 0 : index
    %c0_2 = arith.constant 0 : index
    %1 = vector.load %arg3[%c0_1, %c0_2] : memref<32x1xf32, #tpu.memory_space<vmem>>, vector<32x1xf32>
    %c0_3 = arith.constant 0 : index
    %c0_4 = arith.constant 0 : index
    %2 = vector.load %arg4[%c0_3, %c0_4] : memref<32x32xf32, #tpu.memory_space<vmem>>, vector<32x32xf32>
    %c0_5 = arith.constant 0 : index
    %c0_6 = arith.constant 0 : index
    %3 = vector.load %arg5[%c0_5, %c0_6] : memref<32x1xf32, #tpu.memory_space<vmem>>, vector<32x1xf32>
    %c0_7 = arith.constant 0 : index
    %c0_8 = arith.constant 0 : index
    %4 = vector.load %arg6[%c0_7, %c0_8] : memref<2x32xf32, #tpu.memory_space<vmem>>, vector<2x32xf32>
    %c0_9 = arith.constant 0 : index
    %c0_10 = arith.constant 0 : index
    %5 = vector.load %arg7[%c0_9, %c0_10] : memref<2x1xf32, #tpu.memory_space<vmem>>, vector<2x1xf32>
    %c0_11 = arith.constant 0 : index
    %c0_12 = arith.constant 0 : index
    %6 = vector.load %arg1[%c0_11, %c0_12] : memref<2x128xf32, #tpu.memory_space<vmem>>, vector<2x128xf32>
    %7 = vector.extract_strided_slice %0 {offsets = [0, 0], sizes = [32, 1], strides = [1, 1]} : vector<32x2xf32> to vector<32x1xf32>
    %8 = vector.extract_strided_slice %6 {offsets = [0, 0], sizes = [1, 128], strides = [1, 1]} : vector<2x128xf32> to vector<1x128xf32>
    %9 = vector.broadcast %7 : vector<32x1xf32> to vector<32x128xf32>
    %10 = vector.broadcast %8 : vector<1x128xf32> to vector<32x128xf32>
    %11 = arith.mulf %9, %10 : vector<32x128xf32>
    %12 = vector.extract_strided_slice %0 {offsets = [0, 1], sizes = [32, 1], strides = [1, 1]} : vector<32x2xf32> to vector<32x1xf32>
    %13 = vector.extract_strided_slice %6 {offsets = [1, 0], sizes = [1, 128], strides = [1, 1]} : vector<2x128xf32> to vector<1x128xf32>
    %14 = vector.broadcast %12 : vector<32x1xf32> to vector<32x128xf32>
    %15 = vector.broadcast %13 : vector<1x128xf32> to vector<32x128xf32>
    %16 = arith.mulf %14, %15 : vector<32x128xf32>
    %17 = arith.addf %11, %16 : vector<32x128xf32>
    %18 = vector.broadcast %1 : vector<32x1xf32> to vector<32x128xf32>
    %19 = arith.addf %17, %18 : vector<32x128xf32>
    %20 = math.tanh %19 : vector<32x128xf32>
    %cst = arith.constant dense<0.000000e+00> : vector<32x128xf32>
    %21 = tpu.matmul %2, %20, %cst {dimension_numbers = #tpu.dot_dimension_numbers<[1], [0], [0], [1], [0, 0, 1, 1], [], []>} : vector<32x32xf32>, vector<32x128xf32>, vector<32x128xf32> -> vector<32x128xf32>
    %22 = vector.broadcast %3 : vector<32x1xf32> to vector<32x128xf32>
    %23 = arith.addf %21, %22 : vector<32x128xf32>
    %24 = math.tanh %23 : vector<32x128xf32>
    %cst_13 = arith.constant dense<0.000000e+00> : vector<2x128xf32>
    %25 = tpu.matmul %4, %24, %cst_13 {dimension_numbers = #tpu.dot_dimension_numbers<[1], [0], [0], [1], [0, 0, 1, 1], [], []>} : vector<2x32xf32>, vector<32x128xf32>, vector<2x128xf32> -> vector<2x128xf32>
    %26 = vector.broadcast %5 : vector<2x1xf32> to vector<2x128xf32>
    %27 = arith.addf %25, %26 : vector<2x128xf32>
    %c0_14 = arith.constant 0 : index
    %c0_15 = arith.constant 0 : index
    %28 = vector.load %arg8[%c0_14, %c0_15] : memref<2x128xf32, #tpu.memory_space<vmem>>, vector<2x128xf32>
    tpu.vector_store %arg8[%c0_14, %c0_15], %27 {strides = array<i32>} : memref<2x128xf32, #tpu.memory_space<vmem>>, vector<2x128xf32>,
    return
  }
  func.func @transform_0(%arg0: i32) -> (i32, i32) {
    %c0_i32 = arith.constant 0 : i32
    %c0_i32_0 = arith.constant 0 : i32
    return %c0_i32, %arg0 : i32, i32
  }
  func.func @transform_1(%arg0: i32) -> (i32, i32) {
    %c0_i32 = arith.constant 0 : i32
    %c0_i32_0 = arith.constant 0 : i32
    %c0_i32_1 = arith.constant 0 : i32
    return %c0_i32, %c0_i32_0 : i32, i32
  }
  func.func @transform_2(%arg0: i32) -> (i32, i32) {
    %c0_i32 = arith.constant 0 : i32
    %c0_i32_0 = arith.constant 0 : i32
    %c0_i32_1 = arith.constant 0 : i32
    return %c0_i32, %c0_i32_0 : i32, i32
  }
  func.func @transform_3(%arg0: i32) -> (i32, i32) {
    %c0_i32 = arith.constant 0 : i32
    %c0_i32_0 = arith.constant 0 : i32
    %c0_i32_1 = arith.constant 0 : i32
    return %c0_i32, %c0_i32_0 : i32, i32
  }
  func.func @transform_4(%arg0: i32) -> (i32, i32) {
    %c0_i32 = arith.constant 0 : i32
    %c0_i32_0 = arith.constant 0 : i32
    %c0_i32_1 = arith.constant 0 : i32
    return %c0_i32, %c0_i32_0 : i32, i32
  }
  func.func @transform_5(%arg0: i32) -> (i32, i32) {
    %c0_i32 = arith.constant 0 : i32
    %c0_i32_0 = arith.constant 0 : i32
    %c0_i32_1 = arith.constant 0 : i32
    return %c0_i32, %c0_i32_0 : i32, i32
  }
  func.func @transform_6(%arg0: i32) -> (i32, i32) {
    %c0_i32 = arith.constant 0 : i32
    %c0_i32_0 = arith.constant 0 : i32
    %c0_i32_1 = arith.constant 0 : i32
    return %c0_i32, %c0_i32_0 : i32, i32
  }
  func.func @transform_7(%arg0: i32) -> (i32, i32) {
    %c0_i32 = arith.constant 0 : i32
    %c0_i32_0 = arith.constant 0 : i32
    return %c0_i32, %arg0 : i32, i32
  }
}

</mosaic_0001>

<bundles_post_ra>
// kernel: tpu_custom_call.1
= control target key start
LH: loop header
LB: loop body
LE: loop exit
PB: predicated region body
PF: predicated region fallthrough
CT: control target
= control target key end

     0   :  { %v438_v2 = vmov 1   ;;  %v439_v3 = vmov 0   ;;  %s548_s0 = inlined_call_operand.vmem [shape: f32[2,8], index: 0, kind: input, shape index: {}]   ;;  %s549_s1 = inlined_call_operand.vmem [shape: f32[32,2], index: 1, kind: input, shape index: {}]   ;;  %s550_s2 = inlined_call_operand.vmem [shape: f32[32,1], index: 2, kind: input, shape index: {}]   ;;  %s551_s3 = inlined_call_operand.vmem [shape: f32[32,32], index: 3, kind: input, shape index: {}]   ;;  %s552_s4 = inlined_call_operand.vmem [shape: f32[32,1], index: 4, kind: input, shape index: {}]   ;;  %s553_s5 = inlined_call_operand.vmem [shape: f32[2,32], index: 5, kind: input, shape index: {}]   ;;  %s554_s6 = inlined_call_operand.vmem [shape: f32[2,1], index: 6, kind: input, shape index: {}]   ;;  %s555_s7 = inlined_call_operand.hbm [shape: f32[2,8], index: 7, kind: output, shape index: {}]  }
   0x1   :  { %v30_v0 = vld [vmem:[%s549_s1 + $0x18] sm:$0xff]  ;;  %v29_v1 = vld [vmem:[%s549_s1 + $0x10] sm:$0xff]  ;;  %393 = vset.pattern.permute.xlu0 %v438_v2  ;;  %394 = vset.pattern.permute.xlu1 %v439_v3  ;;  %v28_v4 = vld [vmem:[%s549_s1 + $0x8] sm:$0xff] }
   0x2   :  { %87 = vperm.xlu0 %393, %v30_v0   ;;  %58 = vperm.xlu1 %394, %v29_v1  }
   0x3   :  { %12 = vsyncpa [#allocation3], 0  ;;  %v27_v5 = vld [vmem:[%s549_s1] sm:$0xff]  ;;  %v34_v6 = vld [vmem:[%s550_s2 + $0x18] sm:$0xff]  ;;  %vm150_vm0 = vcmask 261120   ;;  %v66_v16 = vlaneseq  ;;  %v440_v58 = vmov 0.0  }
   0x4   :  { %v32_v7 = vld [vmem:[%s550_s2 + $0x8] sm:$0xff]  ;;  %v42_v8 = vld [vmem:[%s552_s4 + $0x18] sm:$0xff]  ;;  %v33_v9 = vld [vmem:[%s550_s2 + $0x10] sm:$0xff]  ;;  %377 = vmatprep.subr.mxu1 %v440_v58  ;;  %vm441_vm1 = vmmov 0   ;;  %s442_s10 = smov [#allocation2]  }
   0x5   :  { %v40_v10 = vld [vmem:[%s552_s4 + $0x8] sm:$0xff]  ;;  %v31_v11 = vld [vmem:[%s550_s2] sm:$0xff]  ;;  %v41_v13 = vld [vmem:[%s552_s4 + $0x10] sm:$0xff]  ;;  %v67_v17 = vshrl.u32 %v66_v16, 7  ;;  %385 = vmatprep.mubr.msk.f32.mxu1 %vm441_vm1, %v440_v58  ;;  %s337_s11 = sshll.u32 %s442_s10, 4  ;;  %s338_s11 = int_to_ptr.vmem [resolvable:$true] %s337_s11 }
   0x6   :  { %395 = vset.pattern.permute.xlu1 %v438_v2  ;;  %79 = vperm.xlu0 %393, %v28_v4   ;;  %v44_v12 = vld [vmem:[%s554_s6] sm:$0x3]  ;;  %v36_v55 = vld [vmem:[%s551_s3 + $0x8] sm:$0xff]  ;;  %v37_v56 = vld [vmem:[%s551_s3 + $0x10] sm:$0xff]  ;;  %s416_s12 = scalar_lea.vmem %s338_s11, 32  ;;  %p421_p1 = scmp.lt.s32.totalorder %s338_s11, %s338_s11 }
   0x7   :  { %83 = vperm.xlu1 %395, %v29_v1   ;;  %v39_v14 = vld [vmem:[%s552_s4] sm:$0xff]  ;;  %v92_v20 = vsub.s32 1, %v67_v17  ;;  %v68_v21 = vsub.s32 0, %v67_v17  ;;  %v38_v57 = vld [vmem:[%s551_s3 + $0x18] sm:$0xff]  ;;  %p417_p0 = scmp.ne.s32.totalorder %s338_s11, %s416_s12  ;;  %p422_p2 = scmp.lt.s32.totalorder %s416_s12, %s416_s12 }
   0x8   :  { %v35_v15 = vld [vmem:[%s551_s3] sm:$0xff] }
   0x9   :  { %371 = vmatprep.mubr.msk.f32.mxu0 %vm150_vm0, %v35_v15  ;;  %v45_v23 = vld [vmem:[%s548_s0] sm:$0x3]  ;;  %p423_p3 = por %p422_p2, %p421_p1 }
   0xa   :  { %397 = vset.pattern.permute.xlu0 %v439_v3  ;;  %v93_v25 = vrot.slane %v45_v23, %v92_v20  ;;  %v69_v26 = vrot.slane %v45_v23, %v68_v21 }
   0xb   :  { %396 = vset.pattern.permute.xlu1 %v439_v3  ;;  %63 = vperm.xlu0 %397, %v30_v0   ;;  %p424_p4 = pnand %p423_p3, %p417_p0 }
   0xc   :  { %53 = vperm.xlu1 %396, %v28_v4  }
   0xf   :  { %48 = vperm.xlu0 %397, %v27_v5  }
  0x10   :  { %119 = vperm.xlu1 %396, %v34_v6  }
  0x13   :  { %109 = vperm.xlu0 %397, %v32_v7  }
  0x14   :  { %398 = vset.pattern.permute.xlu1 %v438_v2 }
  0x15   :  { %75 = vperm.xlu1 %398, %v27_v5  }
  0x17   :  { %147 = vperm.xlu0 %397, %v42_v8  }
  0x19   :  { %399 = vset.pattern.permute.xlu1 %v439_v3 }
  0x1a   :  { %114 = vperm.xlu1 %399, %v33_v9  }
  0x1b   :  { %137 = vperm.xlu0 %397, %v40_v10   ;;  %v43_v10 = vld [vmem:[%s553_s5] sm:$0x3] }
  0x1e   :  { %104 = vperm.xlu1 %399, %v31_v11  }
  0x1f   :  { %254 = vperm.xlu0 %397, %v44_v12  }
  0x22   :  { %142 = vperm.xlu1 %399, %v41_v13  }
  0x26   :  { %132 = vperm.xlu1 %399, %v39_v14  }
  0x7d   :  { %v59_v18 = vpop.permute.xlu1 %58  ;;  %v88_v19 = vpop.permute.xlu0 %87 }
  0x7e   :  { %v97_v27 = vmul.f32 %v93_v25, %v88_v19  ;;  %v72_v39 = vmul.f32 %v69_v26, %v59_v18 }
  0x81   :  { %v80_v22 = vpop.permute.xlu0 %79 }
  0x82   :  { %v84_v24 = vpop.permute.xlu1 %83  ;;  %v95_v36 = vmul.f32 %v93_v25, %v80_v22 }
  0x83   :  { %v96_v35 = vmul.f32 %v93_v25, %v84_v24 }
  0x85   :  { %v100_v44 = vadd.f32 %v96_v35, %v72_v39 }
  0x86   :  { %v64_v28 = vpop.permute.xlu0 %63 }
  0x87   :  { %v73_v29 = vmul.f32 %v69_v26, %v64_v28  ;;  %v54_v30 = vpop.permute.xlu1 %53 }
  0x88   :  { %v71_v37 = vmul.f32 %v69_v26, %v54_v30 }
  0x89   :  { %v101_v31 = vadd.f32 %v97_v27, %v73_v29 }
  0x8a   :  { %v49_v34 = vpop.permute.xlu0 %48  ;;  %v99_v42 = vadd.f32 %v95_v36, %v71_v37 }
  0x8b   :  { %v120_v32 = vpop.permute.xlu1 %119  ;;  %v70_v41 = vmul.f32 %v69_v26, %v49_v34 }
  0x8c   :  { %v125_v33 = vadd.f32 %v120_v32, %v101_v31 }
  0x8e   :  { %400 = vtanh.f32 %v125_v33  ;;  %v110_v40 = vpop.permute.xlu0 %109 }
  0x8f   :  { %v123_v46 = vadd.f32 %v110_v40, %v99_v42 }
  0x90   :  { %v76_v38 = vpop.permute.xlu1 %75 }
  0x91   :  { %v94_v43 = vmul.f32 %v93_v25, %v76_v38 }
  0x92   :  { %v148_v59 = vpop.permute.xlu0 %147 }
  0x93   :  { %v98_v48 = vadd.f32 %v94_v43, %v70_v41 }
  0x95   :  { %v115_v45 = vpop.permute.xlu1 %114 }
  0x96   :  { %v124_v47 = vadd.f32 %v115_v45, %v100_v44  ;;  %v138_v1 = vpop.permute.xlu0 %137 }
  0x98   :  { %402 = vtanh.f32 %v124_v47 }
  0x99   :  { %v105_v49 = vpop.permute.xlu1 %104  ;;  %404 = vtanh.f32 %v123_v46 }
  0x9a   :  { %v122_v50 = vadd.f32 %v105_v49, %v98_v48  ;;  %v255_v12 = vpop.permute.xlu0 %254 }
  0x9b   :  { %v401_v51 = vpop.eup %400 }
  0x9c   :  { %406 = vtanh.f32 %v122_v50  ;;  %363 = vmatprep.subr.mxu0 %v401_v51 }
  0x9d   :  { %364 = vmatpush3.msra.mxu0 %v401_v51  ;;  %v143_v61 = vpop.permute.xlu1 %142 }
  0xa1   :  { %v133_v5 = vpop.permute.xlu1 %132 }
  0xa5   :  { %v403_v52 = vpop.eup %402 }
  0xa6   :  { %365 = vmatprep.subr.mxu0 %v403_v52  ;;  %v405_v53 = vpop.eup %404 }
  0xa7   :  { %366 = vmatpush3.msra.mxu0 %v403_v52 }
  0xa8   :  { %367 = vmatprep.subr.mxu0 %v405_v53 }
  0xa9   :  { %v407_v54 = vpop.eup %406  ;;  %368 = vmatpush3.msra.mxu0 %v405_v53 }
  0xaa   :  { %369 = vmatprep.subr.mxu0 %v407_v54 }
  0xab   :  { %370 = vmatpush3.msra.mxu0 %v407_v54 }
  0xac   :  { %372 = vmatmul.mubr.msk.f32.vlgmr.msra.gmra.mxu0 %vm150_vm0, %v36_v55 }
  0xad   :  { %374 = vmatprep.mubr.msk.f32.mxu0 %vm150_vm0, %v37_v56 }
  0xb0   :  { %375 = vmatmul.mubr.msk.f32.gmra.mxu0 %vm150_vm0, %v38_v57 }
 0x16c   :  { %v373_v60 = vpop.f32.mrf.mxu0 }
 0x16d   :  { %v235_v3 = vadd.f32 %v373_v60, %v138_v1 }
 0x16e   :  { %v229_v62 = vpop.f32.mrf.mxu0 }
 0x16f   :  { %v230_v6 = vadd.f32 %v229_v62, %v133_v5 }
 0x170   :  { %v376_v63 = vpop.f32.mrf.mxu0 }
 0x171   :  { %v245_v0 = vadd.f32 %v376_v63, %v148_v59 }
 0x172   :  { %v239_v2 = vpop.f32.mrf.mxu0 }
 0x173   :  { %408 = vtanh.f32 %v245_v0  ;;  %v240_v4 = vadd.f32 %v239_v2, %v143_v61 }
 0x175   :  { %410 = vtanh.f32 %v240_v4 }
 0x176   :  { %412 = vtanh.f32 %v235_v3 }
 0x177   :  { %414 = vtanh.f32 %v230_v6 }
 0x180   :  { %v409_v7 = vpop.eup %408 }
 0x181   :  { %378 = vmatpush3.msra.mxu1 %v409_v7 }
 0x182   :  { %v411_v8 = vpop.eup %410  ;;  %379 = vmatprep.subr.mxu1 %v440_v58 }
 0x183   :  { %380 = vmatpush3.msra.mxu1 %v411_v8  ;;  %v413_v9 = vpop.eup %412 }
 0x184   :  { %381 = vmatprep.subr.mxu1 %v440_v58  ;;  %v415_v11 = vpop.eup %414 }
 0x185   :  { %382 = vmatpush3.msra.mxu1 %v413_v9 }
 0x186   :  { %383 = vmatprep.subr.mxu1 %v440_v58 }
 0x187   :  { %384 = vmatpush3.msra.mxu1 %v415_v11 }
 0x188   :  { %386 = vmatmul.mubr.msk.f32.vlgmr.msra.gmra.mxu1 %vm150_vm0, %v43_v10 }
 0x248   :  { %v326_v13 = vpop.f32.mrf.mxu1 }
 0x249   :  { %v327_v14 = vadd.f32 %v326_v13, %v255_v12 }
 0x24a   :  { %v387_v15 = vpop.f32.mrf.mxu1 }
 0x24b   :  { %330 = vst [vmem:[#allocation2] sm:$0x3] %v327_v14 }
 0x24c   :  { %427 = shalt.err (!%p424_p4)
}
 0x24d   :  { %340 = dma.vmem_to_hbm [thread:$0]  %s338_s11, 32, %s555_s7, [#allocation3]  }
 0x24e   :  { %436 = dma.done.wait [#allocation3], 32  }
 0x24f   :  { %437 = vsyncadd [#allocation3], 4294967264 }
 0x250   :  { %344 = vsyncpa [#allocation3], 1 }

</bundles_post_ra>
